<compile_context>
chip_gen: v6e
topology: v6e:2x2x1
jax: 0.10.0
libtpu: 0.0.40
codegen_flags: <defaults>
</compile_context>

<pallas_src>
import jax
import jax.numpy as jnp
from jax.experimental import pallas as pl
from jax.experimental.pallas import tpu as pltpu


def _round_up(x, m):
    return (x + m - 1) // m * m


def _pad_axis(x, axis, target):
    pad = target - x.shape[axis]
    if pad <= 0:
        return x
    widths = [(0, 0)] * x.ndim
    widths[axis] = (0, pad)
    return jnp.pad(x, widths)


# ---------------------------------------------------------------------------
# Kernel: streamed bilinear core   z[b, o] = sum_f P[b, f] * Wb_flat[f, o]
# Grid = (o-tiles [parallel], K-chunks [arbitrary reduction]).
# ---------------------------------------------------------------------------
def tucker_core_kernel(p_ref, wb_ref, z_ref, acc_ref):
    k = pl.program_id(1)

    @pl.when(k == 0)
    def _():
        acc_ref[...] = jnp.zeros_like(acc_ref)

    # One long-K bf16 MXU matmul per (o-tile, K-chunk); f32 accumulation.
    acc_ref[...] += jnp.dot(p_ref[...], wb_ref[0],
                            preferred_element_type=jnp.float32)

    @pl.when(k == pl.num_programs(1) - 1)
    def _():
        z_ref[0] = acc_ref[...]


# ---------------------------------------------------------------------------
# One-time (parameter-load-time) weight prep.
# ---------------------------------------------------------------------------
def prepare_params(params, *, n_o_tiles=1, core_dtype=jnp.bfloat16):
    """Transpose / pad / re-lay-out weights once, outside the forward path.

    * mm is zero-padded up to a multiple of 128 so every lane tile and the
      K = mm_p**2 contraction are (8,128)-aligned.  Exact: padded columns of
      W0/W1/b* are zero -> padded h0/h1 lanes are zero -> padded Wb rows/cols
      contribute nothing; padded Wout rows are zero.
    * The bilinear core Wb[o,i,j] is stored as (n_o_tiles, mm_p*mm_p, to) in
      `core_dtype` (bf16 by default, halving the dominant HBM stream), with
      each o-tile contiguous so each TensorCore's DMA stream is unstrided
      (use n_o_tiles=2 on v7x to keep both cores busy).
    """
    mm = params["wb"].shape[0]
    mm_p = _round_up(mm, 128)
    assert mm_p % n_o_tiles == 0
    to = mm_p // n_o_tiles

    w0t = _pad_axis(params["w0"].T, 1, mm_p)             # (d0, mm_p)
    w1t = _pad_axis(params["w1"].T, 1, mm_p)             # (d1, mm_p)
    b0 = _pad_axis(params["b0"][None, :], 1, mm_p)       # (1, mm_p)
    b1 = _pad_axis(params["b1"][None, :], 1, mm_p)       # (1, mm_p)
    bb = _pad_axis(params["bb"][None, :], 1, mm_p)       # (1, mm_p)
    woutt = _pad_axis(params["wout"].T, 0, mm_p)         # (mm_p, out)
    bout = params["bout"][None, :]                       # (1, out)

    # Wb[o,i,j] -> Wb_t[i,j,o] -> flat (i*mm_p + j, o) -> (n_o, K, to).
    # TODO(synk): further quantization (int8 on v5e/v6e, fp8 on v7x) with
    # per-i scales folded into P would halve this stream again.
    wbt = jnp.transpose(params["wb"], (1, 2, 0))
    wbt = _pad_axis(_pad_axis(_pad_axis(wbt, 0, mm_p), 1, mm_p), 2, mm_p)
    K = mm_p * mm_p
    wb_core = (wbt.reshape(K, mm_p)
                  .reshape(K, n_o_tiles, to)
                  .transpose(1, 0, 2)
                  .astype(core_dtype))

    return dict(w0t=w0t, b0=b0, w1t=w1t, b1=b1,
                wb_core=wb_core, bb=bb, woutt=woutt, bout=bout)


def _vmem_limit_bytes():
    # Never request the full physical VMEM (64 MiB/TC on v7x); leave headroom
    # for Mosaic internal scratch and the other double-buffered operands.
    try:
        cap = int(pltpu.get_tpu_info().vmem_capacity_bytes)
    except Exception:
        cap = 64 * 1024 * 1024        # conservative (v7x-sized) fallback
    return int(min(cap * 0.85, cap - (8 << 20)))


# ---------------------------------------------------------------------------
# Forward pass.
# ---------------------------------------------------------------------------
def tucker_forward(x0, x1, prep, *, tk=None):
    b = x0.shape[0]
    n_o, K, to = prep["wb_core"].shape
    mm_p = n_o * to
    core_dtype = prep["wb_core"].dtype

    # --- phase-only work stays in XLA (frees kernel VMEM for bigger chunks) --
    h0 = x0 @ prep["w0t"] + prep["b0"]                    # (b, mm_p) f32
    h1 = x1 @ prep["w1t"] + prep["b1"]                    # (b, mm_p) f32
    # Outer product P[b, i*mm_p + j] = h0[b,i] * h1[b,j]; its HBM traffic is
    # ~B/mm of the Wb stream (negligible at small B).  Cast once to the core
    # compute dtype; all accumulation in the kernel stays f32.
    p = (h0[:, :, None] * h1[:, None, :]).reshape(b, K).astype(core_dtype)

    vmem_limit = _vmem_limit_bytes()

    if tk is None:
        # Size the K chunk from the VMEM budget (double-buffered Wb + P blocks
        # in <= ~half the limit) while keeping >= 8 pipeline steps so the
        # chunk-(k+1) Wb DMA overlaps chunk-k compute.
        per_row = 2 * (to + b) * core_dtype.itemsize       # bytes per K row
        tk_cap = max(128, min(int(0.5 * vmem_limit) // per_row, K // 8))
        tk = 128
        for t in range(256, tk_cap + 1, 128):
            if K % t == 0:
                tk = t
    assert K % tk == 0 and tk % 128 == 0, (K, tk)
    n_k = K // tk

    flops = 2 * b * K * mm_p
    bytes_accessed = (K * mm_p * core_dtype.itemsize        # Wb stream (dominant)
                      + n_o * b * K * core_dtype.itemsize   # P (re-read per o tile)
                      + b * mm_p * 4)                       # z tiles out

    z_tiles = pl.pallas_call(
        tucker_core_kernel,
        out_shape=jax.ShapeDtypeStruct((n_o, b, to), jnp.float32),
        grid_spec=pltpu.PrefetchScalarGridSpec(
            num_scalar_prefetch=0,
            grid=(n_o, n_k),                                  # (parallel, reduction)
            in_specs=[
                pl.BlockSpec((b, tk), lambda o, k: (0, k)),          # P chunk
                pl.BlockSpec((1, tk, to), lambda o, k: (o, k, 0)),   # Wb chunk
            ],
            out_specs=pl.BlockSpec((1, b, to), lambda o, k: (o, 0, 0)),
            scratch_shapes=[pltpu.VMEM((b, to), jnp.float32)],       # f32 acc
        ),
        compiler_params=pltpu.CompilerParams(
            dimension_semantics=("parallel", "arbitrary"),
            vmem_limit_bytes=vmem_limit,
        ),
        cost_estimate=pl.CostEstimate(
            flops=flops, transcendentals=0, bytes_accessed=bytes_accessed),
    )(p, prep["wb_core"])

    z = z_tiles.transpose(1, 0, 2).reshape(b, mm_p)          # reassemble o tiles

    # TODO(synk): normalize=True branch (signed-sqrt + L2 norm) not emitted;
    # module default is normalize=False.  All dropouts are 0.0 -> identity.
    return (z + prep["bb"]) @ prep["woutt"] + prep["bout"]


# ---------------------------------------------------------------------------
# Reference + init (PyTorch-default-style uniform init, bound = 1/sqrt(fan_in))
# ---------------------------------------------------------------------------
def init_params(key, d0, d1, mm, out_dim):
    ks = jax.random.split(key, 8)

    def linear(kw, kb, fan_in, fan_out):
        bound = 1.0 / jnp.sqrt(fan_in)
        w = jax.random.uniform(kw, (fan_out, fan_in), jnp.float32, -bound, bound)
        bvec = jax.random.uniform(kb, (fan_out,), jnp.float32, -bound, bound)
        return w, bvec

    w0, b0 = linear(ks[0], ks[1], d0, mm)            # linear0
    w1, b1 = linear(ks[2], ks[3], d1, mm)            # linear1
    bound = 1.0 / jnp.sqrt(mm)
    wb = jax.random.uniform(ks[4], (mm, mm, mm), jnp.float32, -bound, bound)
    bb = jax.random.uniform(ks[5], (mm,), jnp.float32, -bound, bound)
    wout, bout = linear(ks[6], ks[7], mm, out_dim)   # linear_out
    return dict(w0=w0, b0=b0, w1=w1, b1=b1, wb=wb, bb=bb, wout=wout, bout=bout)


def tucker_ref(x0, x1, p):
    h0 = x0 @ p["w0"].T + p["b0"]
    h1 = x1 @ p["w1"].T + p["b1"]
    z = jnp.einsum("bi,oij,bj->bo", h0, p["wb"], h1) + p["bb"]
    return z @ p["wout"].T + p["bout"]


if __name__ == "__main__":
    # Small synthetic shapes (mm_dim scaled down from 1600 -> 128 so the
    # (mm, mm, mm) bilinear core stays tiny).
    B, D0, D1, MM, OUT = 8, 32, 48, 128, 64

    key = jax.random.PRNGKey(0)
    kx0, kx1, kp = jax.random.split(key, 3)
    x0 = jax.random.normal(kx0, (B, D0), jnp.float32)
    x1 = jax.random.normal(kx1, (B, D1), jnp.float32)
    params = init_params(kp, D0, D1, MM, OUT)

    fwd = jax.jit(tucker_forward, static_argnames=("tk",))

    # Default: single o tile, auto-sized multi-step (>=8) streamed K grid.
    prep1 = prepare_params(params)
    out1 = jax.block_until_ready(fwd(x0, x1, prep1))

    # Coverage of the o-parallel path (v7x-style, n_o_tiles=2) + explicit tk.
    prep2 = prepare_params(params, n_o_tiles=2)
    out2 = jax.block_until_ready(fwd(x0, x1, prep2, tk=1024))

    ref = tucker_ref(x0, x1, params)
    assert out1.shape == (B, OUT) and out2.shape == (B, OUT)

    # The two tilings differ only in f32 accumulation order.
    assert jnp.allclose(out1, out2, rtol=1e-3, atol=1e-3), (
        float(jnp.max(jnp.abs(out1 - out2))))

    # bf16-core kernel vs. full-f32 reference.
    max_err = float(jnp.max(jnp.abs(out1 - ref)))
    assert jnp.allclose(out1, ref, rtol=5e-2, atol=5e-2), max_err

    print("KERNEL_OK")
</pallas_src>

<mosaic_0001>
module attributes {stable_mosaic.version = 11 : i64} {
  func.func @tucker_core_kernel(%arg0: i32, %arg1: i32, %arg2: memref<8x2048xbf16, #tpu.memory_space<vmem>>, %arg3: memref<1x2048x128xbf16, #tpu.memory_space<vmem>>, %arg4: memref<1x8x128xf32, #tpu.memory_space<vmem>>, %arg5: memref<8x128xf32, #tpu.memory_space<vmem>>) attributes {dimension_semantics = [#tpu.dimension_semantics<parallel>, #tpu.dimension_semantics<arbitrary>], iteration_bounds = array<i64: 1, 8>, scalar_prefetch = 0 : i64, scratch_operands = 1 : i64, tpu.core_type = #tpu.core_type<tc>, window_params = [{transform_indices = @transform_0, window_bounds = array<i64: 8, 2048>}, {transform_indices = @transform_1, window_bounds = array<i64: 1, 2048, 128>}, {transform_indices = @transform_2, window_bounds = array<i64: 1, 8, 128>}]} {
    %c0_i32 = arith.constant 0 : i32
    %0 = arith.cmpi eq, %arg1, %c0_i32 : i32
    %1 = arith.extui %0 : i1 to i32
    %c0_i32_0 = arith.constant 0 : i32
    %2 = arith.cmpi ne, %1, %c0_i32_0 : i32
    scf.if %2 {
      %cst_10 = arith.constant 0.000000e+00 : f32
      %13 = vector.broadcast %cst_10 : f32 to vector<8x128xf32>
      %c0_11 = arith.constant 0 : index
      %c0_12 = arith.constant 0 : index
      %14 = vector.load %arg5[%c0_11, %c0_12] : memref<8x128xf32, #tpu.memory_space<vmem>>, vector<8x128xf32>
      tpu.vector_store %arg5[%c0_11, %c0_12], %13 {strides = array<i32>} : memref<8x128xf32, #tpu.memory_space<vmem>>, vector<8x128xf32>,
    } else {
    }
    %c0 = arith.constant 0 : index
    %c0_1 = arith.constant 0 : index
    %3 = vector.load %arg5[%c0, %c0_1] : memref<8x128xf32, #tpu.memory_space<vmem>>, vector<8x128xf32>
    %c0_2 = arith.constant 0 : index
    %c0_3 = arith.constant 0 : index
    %4 = vector.load %arg2[%c0_2, %c0_3] : memref<8x2048xbf16, #tpu.memory_space<vmem>>, vector<8x2048xbf16>
    %c0_4 = arith.constant 0 : index
    %c0_5 = arith.constant 0 : index
    %c0_6 = arith.constant 0 : index
    %5 = vector.load %arg3[%c0_4, %c0_5, %c0_6] : memref<1x2048x128xbf16, #tpu.memory_space<vmem>>, vector<1x2048x128xbf16>
    %6 = vector.shape_cast %5 : vector<1x2048x128xbf16> to vector<2048x128xbf16>
    %cst = arith.constant dense<0.000000e+00> : vector<8x128xf32>
    %7 = tpu.matmul %4, %6, %cst {dimension_numbers = #tpu.dot_dimension_numbers<[1], [0], [0], [1], [0, 0, 1, 1], [], []>} : vector<8x2048xbf16>, vector<2048x128xbf16>, vector<8x128xf32> -> vector<8x128xf32>
    %8 = arith.addf %3, %7 : vector<8x128xf32>
    %c0_7 = arith.constant 0 : index
    %c0_8 = arith.constant 0 : index
    %9 = vector.load %arg5[%c0_7, %c0_8] : memref<8x128xf32, #tpu.memory_space<vmem>>, vector<8x128xf32>
    tpu.vector_store %arg5[%c0_7, %c0_8], %8 {strides = array<i32>} : memref<8x128xf32, #tpu.memory_space<vmem>>, vector<8x128xf32>,
    %c7_i32 = arith.constant 7 : i32
    %10 = arith.cmpi eq, %arg1, %c7_i32 : i32
    %11 = arith.extui %10 : i1 to i32
    %c0_i32_9 = arith.constant 0 : i32
    %12 = arith.cmpi ne, %11, %c0_i32_9 : i32
    scf.if %12 {
      %c0_10 = arith.constant 0 : index
      %c0_11 = arith.constant 0 : index
      %13 = vector.load %arg5[%c0_10, %c0_11] : memref<8x128xf32, #tpu.memory_space<vmem>>, vector<8x128xf32>
      %c0_12 = arith.constant 0 : index
      %c0_13 = arith.constant 0 : index
      %c0_14 = arith.constant 0 : index
      %14 = vector.load %arg4[%c0_12, %c0_13, %c0_14] : memref<1x8x128xf32, #tpu.memory_space<vmem>>, vector<1x8x128xf32>
      %15 = vector.shape_cast %14 : vector<1x8x128xf32> to vector<8x128xf32>
      %16 = vector.shape_cast %13 : vector<8x128xf32> to vector<1x8x128xf32>
      tpu.vector_store %arg4[%c0_12, %c0_13, %c0_14], %16 {strides = array<i32>} : memref<1x8x128xf32, #tpu.memory_space<vmem>>, vector<1x8x128xf32>,
    } else {
    }
    return
  }
  func.func @transform_0(%arg0: i32, %arg1: i32) -> (i32, i32) {
    %c0_i32 = arith.constant 0 : i32
    %c0_i32_0 = arith.constant 0 : i32
    return %c0_i32, %arg1 : i32, i32
  }
  func.func @transform_1(%arg0: i32, %arg1: i32) -> (i32, i32, i32) {
    %c0_i32 = arith.constant 0 : i32
    %c0_i32_0 = arith.constant 0 : i32
    return %arg0, %arg1, %c0_i32 : i32, i32, i32
  }
  func.func @transform_2(%arg0: i32, %arg1: i32) -> (i32, i32, i32) {
    %c0_i32 = arith.constant 0 : i32
    %c0_i32_0 = arith.constant 0 : i32
    %c0_i32_1 = arith.constant 0 : i32
    return %arg0, %c0_i32, %c0_i32_0 : i32, i32, i32
  }
}

</mosaic_0001>

<bundles_post_ra>
// kernel: tucker_forward.1
= control target key start
LH: loop header
LB: loop body
LE: loop exit
PB: predicated region body
PF: predicated region fallthrough
CT: control target
= control target key end

     0   :  { %7 = vsyncpa [#allocation4], 0  ;;  %s2586_s0 = inlined_call_operand.vmem [shape: bf16[8,16384], index: 0, kind: input, shape index: {}]   ;;  %s2587_s1 = inlined_call_operand.hbm [shape: bf16[1,16384,128], index: 1, kind: input, shape index: {}]   ;;  %s2588_s2 = inlined_call_operand.vmem [shape: f32[1,8,128], index: 2, kind: output, shape index: {}]  }
   0x1   :  { %9 = vsyncpa [#allocation4 + $0x1], 0  ;;  %s2346_s9 = smov 0   ;;  %s2348_s10 = smov 0  }
   0x2   :  { %s2350_s11 = smov 0   ;;  %s2352_s12 = smov 0  }
   0x3   :  { %s2354_s13 = smov 0   ;;  %s2356_s14 = smov 0  }
   0x4 LB: > { %s1709_s15 = sadd.s32 4294967295, %s2325_s14   ;;  %s24_s16 = sadd.s32 1, %s2321_s13  ;;  %s2325_s14 = sphi %s2356_s14, %s15_s14   ;;  %s2321_s13 = sphi %s2354_s13, %s2596_s13   ;;  %s2317_s12 = sphi %s2352_s12, %s2595_s12   ;;  %s2313_s11 = sphi %s2350_s11, %s2594_s11   ;;  %s2309_s10 = sphi %s2348_s10, %s2593_s10   ;;  %s2305_s9 = sphi %s2346_s9, %s2592_s9  }
   0x5   : > { %p25_p0 = scmp.ge.s32.totalorder %s24_s16, 8  ;;  %s62_s17 = sadd.s32 1, %s2313_s11 }
   0x6   : > { %p69_p1 = scmp.ne.s32.totalorder %s2313_s11, %s2309_s10  ;;  %p70_p2 = scmp.eq.s32.totalorder %s2325_s14, 0 }
   0x7   : > { %s2598_s16 = smov (%p25_p0, %s24_s16), 0  ;;  %p75_p4 = scmp.ne.s32.totalorder %s2309_s10, %s2305_s9 }
   0x8   : > { %p2382_p3 = por %p70_p2, %p69_p1  ;;  %s58_s19 = ssub.s32 %s2321_s13, %s2598_s16 }
   0x9   : > { %p76_p5 = scmp.eq.s32.totalorder %s1709_s15, 0  ;;  %p60_p6 = scmp.eq.s32.totalorder %s58_s19, 0 }
   0xa   : > { %p2051_p8 = scmp.lt.s32.totalorder %s2325_s14, 8  ;;  %s134_s22 = sand.u32 1, %s2313_s11  }
   0xb   : > { %p2389_p7 = por %p76_p5, %p75_p4  ;;  %s1868_s23 = sshll.u32 %s2321_s13, 14 }
   0xc   : > { %s2395_s21 = scalar_select %p60_p6, %s2313_s11, %s62_s17  }
   0xd   : > { %s1712_s24 = sshll.u32 %s134_s22, 10  ;;  %s146_s27 = scalar_lea.hbm %s2587_s1, %s1868_s23 }
   0xe   : > { %s138_s28 = scalar_lea.vmem [#allocation3], %s1712_s24  ;;  %p2404_p9 = pnand %p2051_p8, %p2382_p3 }
   0xf   : > { %s147_s29 = sshll.u32 %s138_s28, 4  ;;  %s135_s3 = scalar_lea.sflag [#allocation4], %s134_s22  ;;  %s148_s29 = int_to_ptr.vmem [resolvable:$true] %s147_s29 }
  0x10   : > { %p2249_p10 = pneg %p2404_p9  ;;  %s2260_s4 = scalar_lea.vmem %s148_s29, 16384 }
  0x11   : > { %p2261_p11 = scmp.ne.s32.totalorder %s148_s29, %s2260_s4  ;;  %s2327_s5 = smov [#allocation3]  }
  0x12   : > { %s2265_s6 = sshll.u32 %s2327_s5, 4  ;;  %s2266_s6 = int_to_ptr.vmem [resolvable:$false] %s2265_s6 }
  0x13   : > { %p2263_p12 = pnand %p2261_p11, %p2249_p10  ;;  %s2267_s7 = scalar_lea.vmem %s2266_s6, 32768 }
  0x14   : > { %p2268_p0 = scmp.lt.s32.totalorder %s148_s29, %s2266_s6  ;;  %p2269_p1 = scmp.lt.s32.totalorder %s2267_s7, %s2260_s4 }
  0x15   : > { %p2264_p13 = pneg %p2263_p12 }
  0x16   : > { %p2270_p2 = por %p2269_p1, %p2268_p0 }
  0x18   : > { %p2271_p3 = pnand %p2270_p2, %p2264_p13 }
  0x1a   : > { %2274 = shalt.err (!%p2271_p3)
}
  0x1b   : > { %s2328_s8 = smov 64   ;;  %s2329_s9 = smov 4  }
  0x1c   : > { %2050 = dma.hbm_to_vmem [thread:$0]  (!%p2404_p9), %s146_s27, 16384, %s148_s29, %s135_s3, %s2328_s8, %s2328_s8, %s2329_s9  }
  0x1d   : > { %p1715_p4 = scmp.ge.s32.totalorder %s2325_s14, 1  ;;  %p155_p5 = scmp.lt.s32.totalorder %s2325_s14, 9 }
  0x1f   : > { %p156_p6 = pnand %p1715_p4, %p155_p5 }
  0x20   : > { %s161_s15 = sand.u32 (!%p156_p6), 1, %s2309_s10  }
  0x21   : > { %159 = sbr.rel (%p156_p6) target bundleno = 390 (0x186), region = 28  ;;  %s1716_s17 = sshll.u32 (!%p156_p6), %s161_s15, 10 }
  0x22   : > { %s162_s18 = scalar_lea.sflag (!%p156_p6), [#allocation4], %s161_s15  ;;  %s2415_s19 = scalar_lea.vmem (!%p156_p6), [#allocation3], %s1716_s17 }
  0x26   : > { %2300 = dma.done.wait (%p2389_p7), %s162_s18, 16384  }
  0x27   : > { %2302 = vsyncadd (%p2389_p7), %s162_s18, 4294950912  ;;  %s1717_s22 = sshll.u32 %s2317_s12, 4  ;;  %p1719_p9 = scmp.ne.s32.totalorder %s2317_s12, 0 }
  0x28   : > { %p191_p8 = scmp.lt.s32.totalorder %s1717_s22, 127 }
  0x29   : > { %205 = sbr.rel (%p1719_p9) target bundleno = 48 (0x30), region = 36 }
  0x2a   : > { %s2600_s22 = smov (!%p191_p8, %s1717_s22), 127 }
  0x2b   : > { %s1718_s23 = sshll.u32 %s2600_s22, 2 }
  0x2c   : > { %s2425_s26 = scalar_lea.vmem %s2586_s0, %s1718_s23 }
  0x2e   : > { %v2330_v0 = vmov 0.0  }
  0x2f   : > { %206 = vst [vmem:[#allocation2] sm:$0xff] %v2330_v0 }
  0x30 PF: > { %v2103_v1 = vld [vmem:[%s2415_s19 + $0x78] sm:$0xff]   ;;  %v2107_v5 = vld [vmem:[%s2415_s19 + $0x70] sm:$0xff]   ;;  %v2111_v9 = vld [vmem:[%s2415_s19 + $0x68] sm:$0xff]   ;;  %p1864_p7 = scmp.ne.s32.totalorder %s2317_s12, 7 }
  0x31   : > { %v2104_v2 = vld [vmem:[%s2415_s19 + $0xf8] sm:$0xff]   ;;  %1869 = vmatprep.subr.bf16.mxu0 %v2103_v1  ;;  %v2108_v6 = vld [vmem:[%s2415_s19 + $0xf0] sm:$0xff]   ;;  %v2112_v10 = vld [vmem:[%s2415_s19 + $0xe8] sm:$0xff]  }
  0x32   : > { %v2105_v3 = vld [vmem:[%s2415_s19 + $0x38] sm:$0xff]   ;;  %1891 = vmatprep.subr.bf16.mxu1 %v2104_v2  ;;  %v2109_v7 = vld [vmem:[%s2415_s19 + $0x30] sm:$0xff]   ;;  %v2113_v11 = vld [vmem:[%s2415_s19 + $0x28] sm:$0xff]  }
  0x33   : > { %v2106_v4 = vld [vmem:[%s2415_s19 + $0xb8] sm:$0xff]   ;;  %1870 = vmatpush3.bf16.msra.mxu0 %v2105_v3  ;;  %v2110_v8 = vld [vmem:[%s2415_s19 + $0xb0] sm:$0xff]   ;;  %v2114_v12 = vld [vmem:[%s2415_s19 + $0xa8] sm:$0xff]  }
  0x34   : > { %1892 = vmatpush3.bf16.msra.mxu1 %v2106_v4  ;;  %1871 = vmatprep.subr.bf16.mxu0 %v2107_v5  ;;  %v2115_v13 = vld [vmem:[%s2415_s19 + $0x60] sm:$0xff]   ;;  %v2119_v17 = vld [vmem:[%s2415_s19 + $0x58] sm:$0xff]   ;;  %v2123_v21 = vld [vmem:[%s2415_s19 + $0x50] sm:$0xff]  }
  0x35   : > { %1893 = vmatprep.subr.bf16.mxu1 %v2108_v6  ;;  %v2116_v14 = vld [vmem:[%s2415_s19 + $0xe0] sm:$0xff]   ;;  %v2120_v18 = vld [vmem:[%s2415_s19 + $0xd8] sm:$0xff]   ;;  %v2124_v22 = vld [vmem:[%s2415_s19 + $0xd0] sm:$0xff]  }
  0x36   : > { %v2117_v15 = vld [vmem:[%s2415_s19 + $0x20] sm:$0xff]   ;;  %v2121_v19 = vld [vmem:[%s2415_s19 + $0x18] sm:$0xff]   ;;  %v2125_v23 = vld [vmem:[%s2415_s19 + $0x10] sm:$0xff]  }
  0x37   : > { %1872 = vmatpush3.bf16.msra.mxu0 %v2109_v7  ;;  %v2118_v16 = vld [vmem:[%s2415_s19 + $0xa0] sm:$0xff]   ;;  %v2122_v20 = vld [vmem:[%s2415_s19 + $0x98] sm:$0xff]   ;;  %v2126_v24 = vld [vmem:[%s2415_s19 + $0x90] sm:$0xff]  }
  0x38   : > { %1894 = vmatpush3.bf16.msra.mxu1 %v2110_v8  ;;  %1873 = vmatprep.subr.bf16.mxu0 %v2111_v9  ;;  %v2127_v25 = vld [vmem:[%s2415_s19 + $0x48] sm:$0xff]   ;;  %v2131_v29 = vld [vmem:[%s2415_s19 + $0x40] sm:$0xff]   ;;  %v208_v33 = vld [vmem:[%s2425_s26] sm:$0xff] }
  0x39   : > { %1895 = vmatprep.subr.bf16.mxu1 %v2112_v10  ;;  %v2128_v26 = vld [vmem:[%s2415_s19 + $0xc8] sm:$0xff]   ;;  %v2132_v30 = vld [vmem:[%s2415_s19 + $0xc0] sm:$0xff]   ;;  %v1720_v35 = vcombine.low %v208_v33, %v208_v33  ;;  %v1721_v36 = vcombine.high %v208_v33, %v208_v33  ;;  %v2139_v39 = vld [vmem:[%s2415_s19 + $0x178] sm:$0xff]  }
  0x3a   : > { %v2129_v27 = vld [vmem:[%s2415_s19 + $0x8] sm:$0xff]   ;;  %v2133_v31 = vld [vmem:[%s2415_s19] sm:$0xff]   ;;  %v2140_v40 = vld [vmem:[%s2415_s19 + $0x1f8] sm:$0xff]  }
  0x3b   : > { %1874 = vmatpush3.bf16.msra.mxu0 %v2113_v11  ;;  %v2130_v28 = vld [vmem:[%s2415_s19 + $0x88] sm:$0xff]   ;;  %v2134_v32 = vld [vmem:[%s2415_s19 + $0x80] sm:$0xff]   ;;  %1328 = vmatprep.mubr.bf16.mxu0 %v1721_v36  ;;  %v2141_v41 = vld [vmem:[%s2415_s19 + $0x138] sm:$0xff]  }
  0x3c   : > { %1896 = vmatpush3.bf16.msra.mxu1 %v2114_v12  ;;  %1875 = vmatprep.subr.bf16.mxu0 %v2115_v13  ;;  %v209_v34 = vld [vmem:[%s2425_s26 + $0x8] sm:$0xff]  ;;  %v2142_v42 = vld [vmem:[%s2415_s19 + $0x1b8] sm:$0xff]   ;;  %v2143_v43 = vld [vmem:[%s2415_s19 + $0x170] sm:$0xff]  }
  0x3d   : > { %1897 = vmatprep.subr.bf16.mxu1 %v2116_v14  ;;  %v1722_v37 = vcombine.low %v209_v34, %v209_v34  ;;  %v1723_v38 = vcombine.high %v209_v34, %v209_v34  ;;  %v2144_v44 = vld [vmem:[%s2415_s19 + $0x1f0] sm:$0xff]   ;;  %v2147_v47 = vld [vmem:[%s2415_s19 + $0x168] sm:$0xff]   ;;  %v2151_v51 = vld [vmem:[%s2415_s19 + $0x160] sm:$0xff]  }
  0x3e   : > { %v2145_v45 = vld [vmem:[%s2415_s19 + $0x130] sm:$0xff]   ;;  %v2148_v48 = vld [vmem:[%s2415_s19 + $0x1e8] sm:$0xff]   ;;  %v2152_v52 = vld [vmem:[%s2415_s19 + $0x1e0] sm:$0xff]  }
  0x3f   : > { %1876 = vmatpush3.bf16.msra.mxu0 %v2117_v15  ;;  %1368 = vmatprep.mubr.bf16.mxu1 %v1723_v38  ;;  %v2146_v46 = vld [vmem:[%s2415_s19 + $0x1b0] sm:$0xff]   ;;  %v2149_v49 = vld [vmem:[%s2415_s19 + $0x128] sm:$0xff]   ;;  %v2153_v53 = vld [vmem:[%s2415_s19 + $0x120] sm:$0xff]  }
  0x40   : > { %1898 = vmatpush3.bf16.msra.mxu1 %v2118_v16  ;;  %1877 = vmatprep.subr.bf16.mxu0 %v2119_v17  ;;  %v2150_v50 = vld [vmem:[%s2415_s19 + $0x1a8] sm:$0xff]   ;;  %v2154_v54 = vld [vmem:[%s2415_s19 + $0x1a0] sm:$0xff]   ;;  %v2155_v55 = vld [vmem:[%s2415_s19 + $0x158] sm:$0xff]  }
  0x41   : > { %1899 = vmatprep.subr.bf16.mxu1 %v2120_v18  ;;  %v2156_v56 = vld [vmem:[%s2415_s19 + $0x1d8] sm:$0xff]   ;;  %v2159_v59 = vld [vmem:[%s2415_s19 + $0x150] sm:$0xff]   ;;  %v2163_v63 = vld [vmem:[%s2415_s19 + $0x148] sm:$0xff]  }
  0x42   : > { %v2157_v57 = vld [vmem:[%s2415_s19 + $0x118] sm:$0xff]   ;;  %v2160_v60 = vld [vmem:[%s2415_s19 + $0x1d0] sm:$0xff]   ;;  %v2164_v0 = vld [vmem:[%s2415_s19 + $0x1c8] sm:$0xff]  }
  0x43   : > { %1878 = vmatpush3.bf16.msra.mxu0 %v2121_v19  ;;  %v2158_v58 = vld [vmem:[%s2415_s19 + $0x198] sm:$0xff]   ;;  %v2161_v61 = vld [vmem:[%s2415_s19 + $0x110] sm:$0xff]   ;;  %v2165_v1 = vld [vmem:[%s2415_s19 + $0x108] sm:$0xff]  }
  0x44   : > { %1900 = vmatpush3.bf16.msra.mxu1 %v2122_v20  ;;  %1879 = vmatprep.subr.bf16.mxu0 %v2123_v21  ;;  %v2162_v62 = vld [vmem:[%s2415_s19 + $0x190] sm:$0xff]   ;;  %v2166_v2 = vld [vmem:[%s2415_s19 + $0x188] sm:$0xff]   ;;  %v2167_v3 = vld [vmem:[%s2415_s19 + $0x140] sm:$0xff]  }
  0x45   : > { %1901 = vmatprep.subr.bf16.mxu1 %v2124_v22  ;;  %v2168_v4 = vld [vmem:[%s2415_s19 + $0x1c0] sm:$0xff]   ;;  %v210_v7 = vld [vmem:[%s2425_s26 + $0x10] sm:$0xff]  ;;  %v211_v10 = vld [vmem:[%s2425_s26 + $0x18] sm:$0xff] }
  0x46   : > { %v2169_v5 = vld [vmem:[%s2415_s19 + $0x100] sm:$0xff]   ;;  %v1724_v8 = vcombine.low %v210_v7, %v210_v7  ;;  %v1725_v9 = vcombine.high %v210_v7, %v210_v7  ;;  %v1726_v11 = vcombine.low %v211_v10, %v211_v10  ;;  %v1727_v12 = vcombine.high %v211_v10, %v211_v10  ;;  %v2175_v13 = vld [vmem:[%s2415_s19 + $0x278] sm:$0xff]   ;;  %v2179_v17 = vld [vmem:[%s2415_s19 + $0x270] sm:$0xff]  }
  0x47   : > { %1880 = vmatpush3.bf16.msra.mxu0 %v2125_v23  ;;  %v2170_v6 = vld [vmem:[%s2415_s19 + $0x180] sm:$0xff]   ;;  %v2176_v14 = vld [vmem:[%s2415_s19 + $0x2f8] sm:$0xff]   ;;  %v2180_v18 = vld [vmem:[%s2415_s19 + $0x2f0] sm:$0xff]  }
  0x48   : > { %1902 = vmatpush3.bf16.msra.mxu1 %v2126_v24  ;;  %1881 = vmatprep.subr.bf16.mxu0 %v2127_v25  ;;  %v2177_v15 = vld [vmem:[%s2415_s19 + $0x238] sm:$0xff]   ;;  %v2181_v19 = vld [vmem:[%s2415_s19 + $0x230] sm:$0xff]   ;;  %v2183_v21 = vld [vmem:[%s2415_s19 + $0x268] sm:$0xff]  }
  0x49   : > { %1903 = vmatprep.subr.bf16.mxu1 %v2128_v26  ;;  %v2178_v16 = vld [vmem:[%s2415_s19 + $0x2b8] sm:$0xff]   ;;  %v2182_v20 = vld [vmem:[%s2415_s19 + $0x2b0] sm:$0xff]   ;;  %v2184_v22 = vld [vmem:[%s2415_s19 + $0x2e8] sm:$0xff]  }
  0x4a   : > { %v2185_v23 = vld [vmem:[%s2415_s19 + $0x228] sm:$0xff]   ;;  %v2187_v25 = vld [vmem:[%s2415_s19 + $0x260] sm:$0xff]   ;;  %v2195_v33 = vld [vmem:[%s2415_s19 + $0x250] sm:$0xff]  }
  0x4b   : > { %1882 = vmatpush3.bf16.msra.mxu0 %v2129_v27  ;;  %v2186_v24 = vld [vmem:[%s2415_s19 + $0x2a8] sm:$0xff]   ;;  %v2188_v26 = vld [vmem:[%s2415_s19 + $0x2e0] sm:$0xff]   ;;  %v2196_v34 = vld [vmem:[%s2415_s19 + $0x2d0] sm:$0xff]  }
  0x4c   : > { %1904 = vmatpush3.bf16.msra.mxu1 %v2130_v28  ;;  %1883 = vmatprep.subr.bf16.mxu0 %v2131_v29  ;;  %v2189_v27 = vld [vmem:[%s2415_s19 + $0x220] sm:$0xff]   ;;  %v2191_v29 = vld [vmem:[%s2415_s19 + $0x258] sm:$0xff]   ;;  %v2198_v36 = vld [vmem:[%s2415_s19 + $0x290] sm:$0xff]  }
  0x4d   : > { %1905 = vmatprep.subr.bf16.mxu1 %v2132_v30  ;;  %v2190_v28 = vld [vmem:[%s2415_s19 + $0x2a0] sm:$0xff]   ;;  %v2192_v30 = vld [vmem:[%s2415_s19 + $0x2d8] sm:$0xff]   ;;  %v2200_v38 = vld [vmem:[%s2415_s19 + $0x2c8] sm:$0xff]  }
  0x4e   : > { %v2231_v7 = vld [vmem:[%s2415_s19 + $0x350] sm:$0xff]  }
  0x4f   : > { %1884 = vmatpush3.bf16.msra.mxu0 %v2133_v31  ;;  %v2193_v31 = vld [vmem:[%s2415_s19 + $0x218] sm:$0xff]   ;;  %v2234_v10 = vld [vmem:[%s2415_s19 + $0x390] sm:$0xff]  }
  0x50   : > { %1906 = vmatpush3.bf16.msra.mxu1 %v2134_v32  ;;  %1913 = vmatprep.subr.bf16.mxu0 %v2139_v39  ;;  %v2194_v32 = vld [vmem:[%s2415_s19 + $0x298] sm:$0xff]   ;;  %v2201_v39 = vld [vmem:[%s2415_s19 + $0x208] sm:$0xff]  }
  0x51   : > { %1935 = vmatprep.subr.bf16.mxu1 %v2140_v40  ;;  %v2202_v40 = vld [vmem:[%s2415_s19 + $0x288] sm:$0xff]  }
  0x52   : > { %1329 = vmatmul.mubr.bf16.vlgmr.msra.gmra.mxu0 %v1720_v35  ;;  %v2197_v35 = vld [vmem:[%s2415_s19 + $0x210] sm:$0xff]  }
  0x53   : > { %1369 = vmatmul.mubr.bf16.vlgmr.msra.gmra.mxu1 %v1722_v37  ;;  %1914 = vmatpush3.bf16.msra.mxu0 %v2141_v41  ;;  %v2199_v37 = vld [vmem:[%s2415_s19 + $0x248] sm:$0xff]   ;;  %v2203_v41 = vld [vmem:[%s2415_s19 + $0x240] sm:$0xff]  }
  0x54   : > { %1936 = vmatpush3.bf16.msra.mxu1 %v2142_v42  ;;  %1915 = vmatprep.subr.bf16.mxu0 %v2143_v43  ;;  %v2204_v42 = vld [vmem:[%s2415_s19 + $0x2c0] sm:$0xff]  }
  0x55   : > { %1937 = vmatprep.subr.bf16.mxu1 %v2144_v44  ;;  %1408 = vmatprep.mubr.bf16.mxu0 %v1725_v9  ;;  %v2205_v43 = vld [vmem:[%s2415_s19 + $0x200] sm:$0xff]   ;;  %v2233_v9 = vld [vmem:[%s2415_s19 + $0x310] sm:$0xff]  }
  0x56   : > { %1448 = vmatprep.mubr.bf16.mxu1 %v1727_v12  ;;  %v2206_v44 = vld [vmem:[%s2415_s19 + $0x280] sm:$0xff]   ;;  %v2236_v12 = vld [vmem:[%s2415_s19 + $0x3c8] sm:$0xff]  }
  0x57   : > { %1916 = vmatpush3.bf16.msra.mxu0 %v2145_v45  ;;  %v212_v45 = vld [vmem:[%s2425_s26 + $0x20] sm:$0xff] }
  0x58   : > { %1938 = vmatpush3.bf16.msra.mxu1 %v2146_v46  ;;  %1917 = vmatprep.subr.bf16.mxu0 %v2147_v47  ;;  %v213_v46 = vld [vmem:[%s2425_s26 + $0x28] sm:$0xff]  ;;  %v1728_v47 = vcombine.low %v212_v45, %v212_v45 }
  0x59   : > { %1939 = vmatprep.subr.bf16.mxu1 %v2148_v48  ;;  %v1729_v48 = vcombine.high %v212_v45, %v212_v45 }
  0x5b   : > { %1918 = vmatpush3.bf16.msra.mxu0 %v2149_v49  ;;  %v1730_v49 = vcombine.low %v213_v46, %v213_v46 }
  0x5c   : > { %1940 = vmatpush3.bf16.msra.mxu1 %v2150_v50  ;;  %1919 = vmatprep.subr.bf16.mxu0 %v2151_v51  ;;  %v1731_v50 = vcombine.high %v213_v46, %v213_v46  ;;  %v2211_v51 = vld [vmem:[%s2415_s19 + $0x378] sm:$0xff]  }
  0x5d   : > { %1941 = vmatprep.subr.bf16.mxu1 %v2152_v52  ;;  %v2212_v52 = vld [vmem:[%s2415_s19 + $0x3f8] sm:$0xff]  }
  0x5f   : > { %1920 = vmatpush3.bf16.msra.mxu0 %v2153_v53  ;;  %v2213_v53 = vld [vmem:[%s2415_s19 + $0x338] sm:$0xff]  }
  0x60   : > { %1942 = vmatpush3.bf16.msra.mxu1 %v2154_v54  ;;  %1921 = vmatprep.subr.bf16.mxu0 %v2155_v55  ;;  %v2214_v54 = vld [vmem:[%s2415_s19 + $0x3b8] sm:$0xff]   ;;  %v2215_v55 = vld [vmem:[%s2415_s19 + $0x370] sm:$0xff]  }
  0x61   : > { %1943 = vmatprep.subr.bf16.mxu1 %v2156_v56  ;;  %v2216_v56 = vld [vmem:[%s2415_s19 + $0x3f0] sm:$0xff]  }
  0x63   : > { %1922 = vmatpush3.bf16.msra.mxu0 %v2157_v57  ;;  %v2217_v57 = vld [vmem:[%s2415_s19 + $0x330] sm:$0xff]  }
  0x64   : > { %1944 = vmatpush3.bf16.msra.mxu1 %v2158_v58  ;;  %1923 = vmatprep.subr.bf16.mxu0 %v2159_v59  ;;  %v2218_v58 = vld [vmem:[%s2415_s19 + $0x3b0] sm:$0xff]   ;;  %v2219_v59 = vld [vmem:[%s2415_s19 + $0x368] sm:$0xff]  }
  0x65   : > { %1945 = vmatprep.subr.bf16.mxu1 %v2160_v60  ;;  %v2220_v60 = vld [vmem:[%s2415_s19 + $0x3e8] sm:$0xff]  }
  0x67   : > { %1924 = vmatpush3.bf16.msra.mxu0 %v2161_v61  ;;  %v2221_v61 = vld [vmem:[%s2415_s19 + $0x328] sm:$0xff]  }
  0x68   : > { %1946 = vmatpush3.bf16.msra.mxu1 %v2162_v62  ;;  %1925 = vmatprep.subr.bf16.mxu0 %v2163_v63  ;;  %v2222_v62 = vld [vmem:[%s2415_s19 + $0x3a8] sm:$0xff]   ;;  %v2223_v63 = vld [vmem:[%s2415_s19 + $0x360] sm:$0xff]  }
  0x69   : > { %1947 = vmatprep.subr.bf16.mxu1 %v2164_v0  ;;  %v2224_v0 = vld [vmem:[%s2415_s19 + $0x3e0] sm:$0xff]  }
  0x6b   : > { %1926 = vmatpush3.bf16.msra.mxu0 %v2165_v1  ;;  %v2225_v1 = vld [vmem:[%s2415_s19 + $0x320] sm:$0xff]  }
  0x6c   : > { %1948 = vmatpush3.bf16.msra.mxu1 %v2166_v2  ;;  %1927 = vmatprep.subr.bf16.mxu0 %v2167_v3  ;;  %v2226_v2 = vld [vmem:[%s2415_s19 + $0x3a0] sm:$0xff]   ;;  %v2227_v3 = vld [vmem:[%s2415_s19 + $0x358] sm:$0xff]  }
  0x6d   : > { %1949 = vmatprep.subr.bf16.mxu1 %v2168_v4  ;;  %v2228_v4 = vld [vmem:[%s2415_s19 + $0x3d8] sm:$0xff]  }
  0x6f   : > { %1928 = vmatpush3.bf16.msra.mxu0 %v2169_v5  ;;  %v2229_v5 = vld [vmem:[%s2415_s19 + $0x318] sm:$0xff]  }
  0x70   : > { %1950 = vmatpush3.bf16.msra.mxu1 %v2170_v6  ;;  %1957 = vmatprep.subr.bf16.mxu0 %v2175_v13  ;;  %v2230_v6 = vld [vmem:[%s2415_s19 + $0x398] sm:$0xff]   ;;  %v2237_v13 = vld [vmem:[%s2415_s19 + $0x308] sm:$0xff]  }
  0x71   : > { %1979 = vmatprep.subr.bf16.mxu1 %v2176_v14  ;;  %v2238_v14 = vld [vmem:[%s2415_s19 + $0x388] sm:$0xff]  }
  0x72   : > { %1409 = vmatmul.mubr.bf16.vlgmr.msra.gmra.mxu0 %v1724_v8  ;;  %v2232_v8 = vld [vmem:[%s2415_s19 + $0x3d0] sm:$0xff]  }
  0x73   : > { %1449 = vmatmul.mubr.bf16.vlgmr.msra.gmra.mxu1 %v1726_v11  ;;  %1958 = vmatpush3.bf16.msra.mxu0 %v2177_v15  ;;  %v2235_v11 = vld [vmem:[%s2415_s19 + $0x348] sm:$0xff]   ;;  %v2239_v15 = vld [vmem:[%s2415_s19 + $0x340] sm:$0xff]  }
  0x74   : > { %1980 = vmatpush3.bf16.msra.mxu1 %v2178_v16  ;;  %1959 = vmatprep.subr.bf16.mxu0 %v2179_v17  ;;  %v2240_v16 = vld [vmem:[%s2415_s19 + $0x3c0] sm:$0xff]  }
  0x75   : > { %1981 = vmatprep.subr.bf16.mxu1 %v2180_v18  ;;  %1488 = vmatprep.mubr.bf16.mxu0 %v1729_v48  ;;  %v2241_v17 = vld [vmem:[%s2415_s19 + $0x300] sm:$0xff]  }
  0x76   : > { %1528 = vmatprep.mubr.bf16.mxu1 %v1731_v50  ;;  %v2242_v18 = vld [vmem:[%s2415_s19 + $0x380] sm:$0xff]  }
  0x77   : > { %1960 = vmatpush3.bf16.msra.mxu0 %v2181_v19  ;;  %v214_v19 = vld [vmem:[%s2425_s26 + $0x30] sm:$0xff] }
  0x78   : > { %1982 = vmatpush3.bf16.msra.mxu1 %v2182_v20  ;;  %1961 = vmatprep.subr.bf16.mxu0 %v2183_v21  ;;  %v215_v20 = vld [vmem:[%s2425_s26 + $0x38] sm:$0xff]  ;;  %v1732_v21 = vcombine.low %v214_v19, %v214_v19 }
  0x79   : > { %1983 = vmatprep.subr.bf16.mxu1 %v2184_v22  ;;  %v1733_v22 = vcombine.high %v214_v19, %v214_v19 }
  0x7b   : > { %1962 = vmatpush3.bf16.msra.mxu0 %v2185_v23  ;;  %v1734_v23 = vcombine.low %v215_v20, %v215_v20 }
  0x7c   : > { %1984 = vmatpush3.bf16.msra.mxu1 %v2186_v24  ;;  %1963 = vmatprep.subr.bf16.mxu0 %v2187_v25  ;;  %v1735_v24 = vcombine.high %v215_v20, %v215_v20 }
  0x7d   : > { %1985 = vmatprep.subr.bf16.mxu1 %v2188_v26 }
  0x7f   : > { %1964 = vmatpush3.bf16.msra.mxu0 %v2189_v27 }
  0x80   : > { %1986 = vmatpush3.bf16.msra.mxu1 %v2190_v28  ;;  %1965 = vmatprep.subr.bf16.mxu0 %v2191_v29 }
  0x81   : > { %1987 = vmatprep.subr.bf16.mxu1 %v2192_v30 }
  0x83   : > { %1966 = vmatpush3.bf16.msra.mxu0 %v2193_v31 }
  0x84   : > { %1988 = vmatpush3.bf16.msra.mxu1 %v2194_v32  ;;  %1967 = vmatprep.subr.bf16.mxu0 %v2195_v33 }
  0x85   : > { %1989 = vmatprep.subr.bf16.mxu1 %v2196_v34 }
  0x87   : > { %1968 = vmatpush3.bf16.msra.mxu0 %v2197_v35 }
  0x88   : > { %1990 = vmatpush3.bf16.msra.mxu1 %v2198_v36  ;;  %1969 = vmatprep.subr.bf16.mxu0 %v2199_v37 }
  0x89   : > { %1991 = vmatprep.subr.bf16.mxu1 %v2200_v38 }
  0x8b   : > { %1970 = vmatpush3.bf16.msra.mxu0 %v2201_v39 }
  0x8c   : > { %1992 = vmatpush3.bf16.msra.mxu1 %v2202_v40  ;;  %1971 = vmatprep.subr.bf16.mxu0 %v2203_v41 }
  0x8d   : > { %1993 = vmatprep.subr.bf16.mxu1 %v2204_v42 }
  0x8f   : > { %1972 = vmatpush3.bf16.msra.mxu0 %v2205_v43 }
  0x90   : > { %1994 = vmatpush3.bf16.msra.mxu1 %v2206_v44  ;;  %2001 = vmatprep.subr.bf16.mxu0 %v2211_v51 }
  0x91   : > { %2023 = vmatprep.subr.bf16.mxu1 %v2212_v52 }
  0x92   : > { %1489 = vmatmul.mubr.bf16.vlgmr.msra.gmra.mxu0 %v1728_v47 }
  0x93   : > { %1529 = vmatmul.mubr.bf16.vlgmr.msra.gmra.mxu1 %v1730_v49  ;;  %2002 = vmatpush3.bf16.msra.mxu0 %v2213_v53 }
  0x94   : > { %2024 = vmatpush3.bf16.msra.mxu1 %v2214_v54  ;;  %2003 = vmatprep.subr.bf16.mxu0 %v2215_v55 }
  0x95   : > { %2025 = vmatprep.subr.bf16.mxu1 %v2216_v56  ;;  %1568 = vmatprep.mubr.bf16.mxu0 %v1733_v22 }
  0x96   : > { %1608 = vmatprep.mubr.bf16.mxu1 %v1735_v24 }
  0x97   : > { %2004 = vmatpush3.bf16.msra.mxu0 %v2217_v57 }
  0x98   : > { %2026 = vmatpush3.bf16.msra.mxu1 %v2218_v58  ;;  %2005 = vmatprep.subr.bf16.mxu0 %v2219_v59 }
  0x99   : > { %2027 = vmatprep.subr.bf16.mxu1 %v2220_v60 }
  0x9b   : > { %2006 = vmatpush3.bf16.msra.mxu0 %v2221_v61 }
  0x9c   : > { %2028 = vmatpush3.bf16.msra.mxu1 %v2222_v62  ;;  %2007 = vmatprep.subr.bf16.mxu0 %v2223_v63 }
  0x9d   : > { %2029 = vmatprep.subr.bf16.mxu1 %v2224_v0 }
  0x9f   : > { %2008 = vmatpush3.bf16.msra.mxu0 %v2225_v1 }
  0xa0   : > { %2030 = vmatpush3.bf16.msra.mxu1 %v2226_v2  ;;  %2009 = vmatprep.subr.bf16.mxu0 %v2227_v3 }
  0xa1   : > { %2031 = vmatprep.subr.bf16.mxu1 %v2228_v4 }
  0xa3   : > { %2010 = vmatpush3.bf16.msra.mxu0 %v2229_v5  ;;  %v207_v5 = vld [vmem:[#allocation2] sm:$0xff] }
  0xa4   : > { %2032 = vmatpush3.bf16.msra.mxu1 %v2230_v6  ;;  %2011 = vmatprep.subr.bf16.mxu0 %v2231_v7 }
  0xa5   : > { %2033 = vmatprep.subr.bf16.mxu1 %v2232_v8 }
  0xa7   : > { %2012 = vmatpush3.bf16.msra.mxu0 %v2233_v9 }
  0xa8   : > { %2034 = vmatpush3.bf16.msra.mxu1 %v2234_v10  ;;  %2013 = vmatprep.subr.bf16.mxu0 %v2235_v11 }
  0xa9   : > { %2035 = vmatprep.subr.bf16.mxu1 %v2236_v12 }
  0xab   : > { %2014 = vmatpush3.bf16.msra.mxu0 %v2237_v13 }
  0xac   : > { %2036 = vmatpush3.bf16.msra.mxu1 %v2238_v14  ;;  %2015 = vmatprep.subr.bf16.mxu0 %v2239_v15 }
  0xad   : > { %2037 = vmatprep.subr.bf16.mxu1 %v2240_v16 }
  0xaf   : > { %2016 = vmatpush3.bf16.msra.mxu0 %v2241_v17 }
  0xb0   : > { %2038 = vmatpush3.bf16.msra.mxu1 %v2242_v18 }
  0xb2   : > { %1569 = vmatmul.mubr.bf16.vlgmr.msra.gmra.mxu0 %v1732_v21 }
  0xb3   : > { %1609 = vmatmul.mubr.bf16.vlgmr.msra.gmra.mxu1 %v1734_v23 }
 0x112   : > { %v1885_v25 = vpop.f32.mrf.mxu0 }
 0x113   : > { %v1907_v26 = vpop.f32.mrf.mxu1 }
 0x114   : > { %v1886_v27 = vpop.f32.mrf.mxu0 }
 0x115   : > { %v1908_v28 = vpop.f32.mrf.mxu1  ;;  %v1887_v29 = vadd.f32 %v1886_v27, %v1885_v25 }
 0x116   : > { %v1909_v30 = vadd.f32 %v1908_v28, %v1907_v26  ;;  %v1888_v31 = vpop.f32.mrf.mxu0 }
 0x117   : > { %v1910_v32 = vpop.f32.mrf.mxu1 }
 0x118   : > { %v1371_v33 = vadd.f32 %v1909_v30, %v1887_v29  ;;  %v1889_v34 = vpop.f32.mrf.mxu0 }
 0x119   : > { %v1911_v35 = vpop.f32.mrf.mxu1 }
 0x132   : > { %v1929_v36 = vpop.f32.mrf.mxu0 }
 0x133   : > { %v1951_v37 = vpop.f32.mrf.mxu1 }
 0x134   : > { %v1930_v38 = vpop.f32.mrf.mxu0 }
 0x135   : > { %v1952_v39 = vpop.f32.mrf.mxu1  ;;  %v1931_v52 = vadd.f32 %v1930_v38, %v1929_v36 }
 0x136   : > { %v1932_v40 = vpop.f32.mrf.mxu0  ;;  %v1953_v54 = vadd.f32 %v1952_v39, %v1951_v37 }
 0x137   : > { %v1954_v41 = vpop.f32.mrf.mxu1  ;;  %v1411_v53 = vadd.f32 %v1931_v52, %v1371_v33 }
 0x138   : > { %v1933_v42 = vpop.f32.mrf.mxu0 }
 0x139   : > { %v1955_v43 = vpop.f32.mrf.mxu1  ;;  %v1451_v56 = vadd.f32 %v1953_v54, %v1411_v53 }
 0x152   : > { %v1973_v44 = vpop.f32.mrf.mxu0 }
 0x153   : > { %v1995_v45 = vpop.f32.mrf.mxu1 }
 0x154   : > { %v1974_v46 = vpop.f32.mrf.mxu0 }
 0x155   : > { %v1996_v47 = vpop.f32.mrf.mxu1  ;;  %v1975_v55 = vadd.f32 %v1974_v46, %v1973_v44 }
 0x156   : > { %v1976_v48 = vpop.f32.mrf.mxu0  ;;  %v1997_v58 = vadd.f32 %v1996_v47, %v1995_v45 }
 0x157   : > { %v1998_v49 = vpop.f32.mrf.mxu1  ;;  %v1491_v57 = vadd.f32 %v1975_v55, %v1451_v56 }
 0x158   : > { %v1977_v50 = vpop.f32.mrf.mxu0 }
 0x159   : > { %v1999_v51 = vpop.f32.mrf.mxu1  ;;  %v1531_v62 = vadd.f32 %v1997_v58, %v1491_v57 }
 0x172   : > { %v2017_v59 = vpop.f32.mrf.mxu0 }
 0x173   : > { %v2039_v60 = vpop.f32.mrf.mxu1 }
 0x174   : > { %v2018_v61 = vpop.f32.mrf.mxu0 }
 0x175   : > { %v2019_v63 = vadd.f32 %v2018_v61, %v2017_v59  ;;  %v2040_v0 = vpop.f32.mrf.mxu1 }
 0x176   : > { %v2020_v1 = vpop.f32.mrf.mxu0  ;;  %v2041_v3 = vadd.f32 %v2040_v0, %v2039_v60 }
 0x177   : > { %v1571_v2 = vadd.f32 %v2019_v63, %v1531_v62  ;;  %v2042_v4 = vpop.f32.mrf.mxu1 }
 0x178   : > { %v2021_v6 = vpop.f32.mrf.mxu0 }
 0x179   : > { %v1611_v7 = vadd.f32 %v2041_v3, %v1571_v2  ;;  %v2043_v8 = vpop.f32.mrf.mxu1  ;;  %1621 = sbr.rel (%p1864_p7) target bundleno = 390 (0x186), region = 40 }
 0x17b   : > { %v1616_v9 = vadd.f32 %v1611_v7, %v207_v5 }
 0x17d   : > { %1617 = vst [vmem:[#allocation2] sm:$0xff] %v1616_v9 }
 0x184   : > { %v1622_v10 = vld [vmem:[#allocation2] sm:$0xff] }
 0x185   : > { %1623 = vst [vmem:[%s2588_s2] sm:$0xff] %v1622_v10 }
 0x186 PF: > { %s15_s14 = sadd.s32 1, %s2325_s14   ;;  %s2592_s9 = smov %s2309_s10 }
 0x187   : > { %p12_p10 = scmp.ge.s32.totalorder %s15_s14, 10   ;;  %s2593_s10 = smov %s2313_s11 }
 0x188   : > { %s2594_s11 = smov %s2395_s21  ;;  %s2595_s12 = smov %s2321_s13 }
 0x189   : > { %s2596_s13 = smov %s2598_s16  ;;  %14 = sbr.rel (!%p12_p10) target bundleno = 4 (0x4), region = 79 }
 0x18e   :  { %1643 = vsyncpa [#allocation4], 1 }
 0x18f   :  { %1645 = vsyncpa [#allocation4 + $0x1], 1 }

</bundles_post_ra>
